<compile_context>
chip_gen: v7x
topology: tpu7x:2x2x1
jax: 0.10.0
libtpu: 0.0.40
codegen_flags: <defaults>
</compile_context>

<pallas_src>
import functools

import jax
import jax.numpy as jnp
from jax.experimental import pallas as pl
from jax.experimental.pallas import tpu as pltpu


# ------------------------------ Fused decode kernel ------------------------------

def _decode_kernel(n_layers, hid_dim, ids_ref, emb_ref, *refs):
    """One grid step == one decode step.

    ids_ref : (T, B) int32 in SMEM (scalar prefetch)
    emb_ref : (V, E) embedding table, resident in VMEM
    refs layout:
      inputs : [w_ih_0, w_hh_0, b_0, ..., w_ih_{L-1}, w_hh_{L-1}, b_{L-1},
                fc_w, fc_b, h0, c0]
      outputs: [pred, h_out, c_out]
      scratch: [x_scr (B,E), h_scr (L,B,H), c_scr (L,B,H)]
    """
    H = hid_dim
    n_w = 3 * n_layers
    lstm_refs = refs[:n_w]
    fc_w_ref, fc_b_ref, h0_ref, c0_ref = refs[n_w:n_w + 4]
    pred_ref, h_out_ref, c_out_ref = refs[n_w + 4:n_w + 7]
    x_scr, h_scr, c_scr = refs[n_w + 7:]

    t = pl.program_id(0)
    T = pl.num_programs(0)

    # ---- Initialize the recurrent state from the inputs on the first step ----
    @pl.when(t == 0)
    def _():
        h_scr[...] = h0_ref[...]
        c_scr[...] = c0_ref[...]

    # ---- Embedding lookup: B dynamic-row reads from the resident VMEM table ----
    B = x_scr.shape[0]
    for b in range(B):
        idx = ids_ref[t, b]                                    # SMEM scalar
        x_scr[pl.ds(b, 1), :] = emb_ref[pl.ds(idx, 1), :]      # (1, E) row copy
    x = x_scr[...]                                             # (B, E); dropout == identity

    # ---- LSTM layers (unrolled; state stays in VMEM scratch between steps) ----
    for layer in range(n_layers):
        w_ih_ref = lstm_refs[3 * layer]                        # (in_dim, 4H)
        w_hh_ref = lstm_refs[3 * layer + 1]                    # (H, 4H)
        b_ref = lstm_refs[3 * layer + 2]                       # (1, 4H)
        h_prev = h_scr[layer]                                  # (B, H)
        c_prev = c_scr[layer]                                  # (B, H)

        # Two dots instead of a lane-axis concat of [x, h].
        gates = (jnp.dot(x, w_ih_ref[...], preferred_element_type=jnp.float32)
                 + jnp.dot(h_prev, w_hh_ref[...], preferred_element_type=jnp.float32)
                 + b_ref[...])                                 # (B, 4H), cols [i|f|o|g]

        ifo = jax.nn.sigmoid(gates[:, :3 * H])                 # one sigmoid over 3H
        g_g = jnp.tanh(gates[:, 3 * H:])                       # one tanh over H
        i_g = ifo[:, 0 * H:1 * H]
        f_g = ifo[:, 1 * H:2 * H]
        o_g = ifo[:, 2 * H:3 * H]

        c_new = f_g * c_prev + i_g * g_g
        h_new = o_g * jnp.tanh(c_new)

        h_scr[layer] = h_new
        c_scr[layer] = c_new
        x = h_new                                              # inter-layer dropout == identity

    # ---- FC head on the top layer's hidden state (per-step output block) ----
    pred_ref[0] = (jnp.dot(x, fc_w_ref[...], preferred_element_type=jnp.float32)
                   + fc_b_ref[...])

    # ---- Write the final recurrent state back only on the last step ----
    @pl.when(t == T - 1)
    def _():
        h_out_ref[...] = h_scr[...]
        c_out_ref[...] = c_scr[...]


# ------------------------------ Wrappers ------------------------------

def decoder_decode(params, input_ids_seq, hidden, cell):
    """Fused teacher-forced decode: T steps of Decoder.forward in one pallas_call.

    input_ids_seq: (T, B) int32
    hidden, cell : (n_layers, B, H)
    returns predictions (T, B, O), hidden (n_layers, B, H), cell (n_layers, B, H)
    """
    T, B = input_ids_seq.shape
    n_layers, _, H = hidden.shape
    V, E = params["embedding"].shape
    O = params["fc_w"].shape[1]

    inputs = [params["embedding"]]
    for lp in params["lstm"]:
        inputs += [lp["w_ih"], lp["w_hh"], lp["b"]]
    inputs += [params["fc_w"], params["fc_b"], hidden, cell]

    # Constant index_maps => weights / initial state DMA'd once, resident for all T steps.
    def const2(t, ids):
        return (0, 0)

    def const3(t, ids):
        return (0, 0, 0)

    in_specs = [pl.BlockSpec(params["embedding"].shape, const2)]
    for lp in params["lstm"]:
        in_specs += [pl.BlockSpec(lp["w_ih"].shape, const2),
                     pl.BlockSpec(lp["w_hh"].shape, const2),
                     pl.BlockSpec(lp["b"].shape, const2)]
    in_specs += [pl.BlockSpec(params["fc_w"].shape, const2),
                 pl.BlockSpec(params["fc_b"].shape, const2),
                 pl.BlockSpec(hidden.shape, const3),
                 pl.BlockSpec(cell.shape, const3)]

    out_specs = (
        pl.BlockSpec((1, B, O), lambda t, ids: (t, 0, 0)),     # per-step prediction
        pl.BlockSpec((n_layers, B, H), const3),                # final hidden
        pl.BlockSpec((n_layers, B, H), const3),                # final cell
    )

    kernel = functools.partial(_decode_kernel, n_layers, H)

    grid_spec = pltpu.PrefetchScalarGridSpec(
        num_scalar_prefetch=1,                                 # ids -> SMEM
        grid=(T,),
        in_specs=in_specs,
        out_specs=out_specs,
        scratch_shapes=[
            pltpu.VMEM((B, E), jnp.float32),                   # gathered embeddings
            pltpu.VMEM((n_layers, B, H), jnp.float32),         # h state (carried over grid)
            pltpu.VMEM((n_layers, B, H), jnp.float32),         # c state (carried over grid)
        ],
    )

    return pl.pallas_call(
        kernel,
        grid_spec=grid_spec,
        out_shape=(
            jax.ShapeDtypeStruct((T, B, O), jnp.float32),
            jax.ShapeDtypeStruct((n_layers, B, H), jnp.float32),
            jax.ShapeDtypeStruct((n_layers, B, H), jnp.float32),
        ),
        compiler_params=pltpu.CompilerParams(
            dimension_semantics=("arbitrary",)),               # recurrence => sequential
    )(input_ids_seq.astype(jnp.int32), *inputs)


def decoder_step(params, input_ids, hidden, cell):
    """Exact equivalent of Decoder.forward (eval mode): one decode step.

    input_ids: (B,) int32 token ids
    """
    preds, new_h, new_c = decoder_decode(params, input_ids[None, :], hidden, cell)
    return preds[0], new_h, new_c


# ------------------------------ Pure-JAX reference ------------------------------

def decoder_reference_step(params, ids, hidden, cell):
    H = hidden.shape[2]
    x = params["embedding"][ids]
    new_h, new_c = [], []
    for layer, lp in enumerate(params["lstm"]):
        gates = x @ lp["w_ih"] + hidden[layer] @ lp["w_hh"] + lp["b"]
        # gate column order [i | f | o | g]
        i = jax.nn.sigmoid(gates[:, 0 * H:1 * H])
        f = jax.nn.sigmoid(gates[:, 1 * H:2 * H])
        o = jax.nn.sigmoid(gates[:, 2 * H:3 * H])
        g = jnp.tanh(gates[:, 3 * H:4 * H])
        c = f * cell[layer] + i * g
        h = o * jnp.tanh(c)
        new_h.append(h)
        new_c.append(c)
        x = h
    pred = x @ params["fc_w"] + params["fc_b"]
    return pred, jnp.stack(new_h, axis=0), jnp.stack(new_c, axis=0)


def decoder_reference_decode(params, ids_seq, hidden, cell):
    preds = []
    for t in range(ids_seq.shape[0]):
        p, hidden, cell = decoder_reference_step(params, ids_seq[t], hidden, cell)
        preds.append(p)
    return jnp.stack(preds, axis=0), hidden, cell


# ------------------------------ Parameter init ------------------------------

def init_params(key, output_dim, emb_dim, hid_dim, n_layers):
    """LSTM weights stored as (in_dim, 4H)/(H, 4H) with gate columns [i|f|o|g]
    (a fixed column permutation of PyTorch's (i,f,g,o) layout; mathematically
    the same module), and b = b_ih + b_hh fused."""
    keys = jax.random.split(key, 3 + 4 * n_layers)
    k_emb, k_fcw, k_fcb = keys[0], keys[1], keys[2]
    bound = 1.0 / jnp.sqrt(hid_dim)

    params = {}
    params["embedding"] = jax.random.normal(k_emb, (output_dim, emb_dim), jnp.float32)

    lstm = []
    kidx = 3
    for layer in range(n_layers):
        in_dim = emb_dim if layer == 0 else hid_dim
        k_wi, k_wh, k_bi, k_bh = keys[kidx:kidx + 4]
        kidx += 4
        w_ih = jax.random.uniform(k_wi, (in_dim, 4 * hid_dim), jnp.float32, -bound, bound)
        w_hh = jax.random.uniform(k_wh, (hid_dim, 4 * hid_dim), jnp.float32, -bound, bound)
        b_ih = jax.random.uniform(k_bi, (1, 4 * hid_dim), jnp.float32, -bound, bound)
        b_hh = jax.random.uniform(k_bh, (1, 4 * hid_dim), jnp.float32, -bound, bound)
        lstm.append({"w_ih": w_ih, "w_hh": w_hh, "b": b_ih + b_hh})
    params["lstm"] = lstm

    params["fc_w"] = jax.random.uniform(k_fcw, (hid_dim, output_dim), jnp.float32, -bound, bound)
    params["fc_b"] = jax.random.uniform(k_fcb, (1, output_dim), jnp.float32, -bound, bound)
    return params


# ------------------------------ Main ------------------------------

if __name__ == "__main__":
    output_dim, emb_dim, hid_dim, n_layers = 64, 32, 32, 2
    batch, seq_len = 2, 8

    key = jax.random.PRNGKey(0)
    k_params, k_in, k_h, k_c = jax.random.split(key, 4)

    params = init_params(k_params, output_dim, emb_dim, hid_dim, n_layers)
    ids_seq = jax.random.randint(k_in, (seq_len, batch), 0, output_dim, dtype=jnp.int32)
    hidden = jax.random.normal(k_h, (n_layers, batch, hid_dim), jnp.float32)
    cell = jax.random.normal(k_c, (n_layers, batch, hid_dim), jnp.float32)

    # --- Single step: exact Decoder.forward semantics ---
    step = jax.jit(decoder_step)
    pred, h1, c1 = step(params, ids_seq[0], hidden, cell)
    jax.block_until_ready((pred, h1, c1))
    assert pred.shape == (batch, output_dim)
    assert h1.shape == (n_layers, batch, hid_dim)
    assert c1.shape == (n_layers, batch, hid_dim)

    ref_p, ref_h, ref_c = decoder_reference_step(params, ids_seq[0], hidden, cell)
    assert jnp.allclose(pred, ref_p, atol=5e-4, rtol=5e-4)
    assert jnp.allclose(h1, ref_h, atol=5e-4, rtol=5e-4)
    assert jnp.allclose(c1, ref_c, atol=5e-4, rtol=5e-4)

    # --- Fused multi-step decode: T steps, one pallas_call, weights resident ---
    decode = jax.jit(decoder_decode)
    preds, hT, cT = decode(params, ids_seq, hidden, cell)
    jax.block_until_ready((preds, hT, cT))
    assert preds.shape == (seq_len, batch, output_dim)

    ref_preds, ref_hT, ref_cT = decoder_reference_decode(params, ids_seq, hidden, cell)
    assert jnp.allclose(preds, ref_preds, atol=5e-4, rtol=5e-4)
    assert jnp.allclose(hT, ref_hT, atol=5e-4, rtol=5e-4)
    assert jnp.allclose(cT, ref_cT, atol=5e-4, rtol=5e-4)

    print("KERNEL_OK")
</pallas_src>

<mosaic_0001>
module attributes {stable_mosaic.version = 11 : i64} {
  func.func @_decode_kernel(%arg0: i32, %arg1: memref<1x2xi32, #tpu.memory_space<smem>>, %arg2: memref<64x32xf32, #tpu.memory_space<vmem>>, %arg3: memref<32x128xf32, #tpu.memory_space<vmem>>, %arg4: memref<32x128xf32, #tpu.memory_space<vmem>>, %arg5: memref<1x128xf32, #tpu.memory_space<vmem>>, %arg6: memref<32x128xf32, #tpu.memory_space<vmem>>, %arg7: memref<32x128xf32, #tpu.memory_space<vmem>>, %arg8: memref<1x128xf32, #tpu.memory_space<vmem>>, %arg9: memref<32x64xf32, #tpu.memory_space<vmem>>, %arg10: memref<1x64xf32, #tpu.memory_space<vmem>>, %arg11: memref<2x2x32xf32, #tpu.memory_space<vmem>>, %arg12: memref<2x2x32xf32, #tpu.memory_space<vmem>>, %arg13: memref<1x2x64xf32, #tpu.memory_space<vmem>>, %arg14: memref<2x2x32xf32, #tpu.memory_space<vmem>>, %arg15: memref<2x2x32xf32, #tpu.memory_space<vmem>>, %arg16: memref<2x32xf32, #tpu.memory_space<vmem>>, %arg17: memref<2x2x32xf32, #tpu.memory_space<vmem>>, %arg18: memref<2x2x32xf32, #tpu.memory_space<vmem>>) attributes {dimension_semantics = [#tpu.dimension_semantics<arbitrary>], iteration_bounds = array<i64: 1>, scalar_prefetch = 1 : i64, scratch_operands = 3 : i64, tpu.core_type = #tpu.core_type<tc>, window_params = [{pipeline_mode = #tpu.pipeline_mode<synchronous>, transform_indices = @transform_0, window_bounds = array<i64: 64, 32>}, {pipeline_mode = #tpu.pipeline_mode<synchronous>, transform_indices = @transform_1, window_bounds = array<i64: 32, 128>}, {pipeline_mode = #tpu.pipeline_mode<synchronous>, transform_indices = @transform_2, window_bounds = array<i64: 32, 128>}, {pipeline_mode = #tpu.pipeline_mode<synchronous>, transform_indices = @transform_3, window_bounds = array<i64: 1, 128>}, {pipeline_mode = #tpu.pipeline_mode<synchronous>, transform_indices = @transform_4, window_bounds = array<i64: 32, 128>}, {pipeline_mode = #tpu.pipeline_mode<synchronous>, transform_indices = @transform_5, window_bounds = array<i64: 32, 128>}, {pipeline_mode = #tpu.pipeline_mode<synchronous>, transform_indices = @transform_6, window_bounds = array<i64: 1, 128>}, {pipeline_mode = #tpu.pipeline_mode<synchronous>, transform_indices = @transform_7, window_bounds = array<i64: 32, 64>}, {pipeline_mode = #tpu.pipeline_mode<synchronous>, transform_indices = @transform_8, window_bounds = array<i64: 1, 64>}, {pipeline_mode = #tpu.pipeline_mode<synchronous>, transform_indices = @transform_9, window_bounds = array<i64: 2, 2, 32>}, {pipeline_mode = #tpu.pipeline_mode<synchronous>, transform_indices = @transform_10, window_bounds = array<i64: 2, 2, 32>}, {transform_indices = @transform_11, window_bounds = array<i64: 1, 2, 64>}, {pipeline_mode = #tpu.pipeline_mode<synchronous>, transform_indices = @transform_12, window_bounds = array<i64: 2, 2, 32>}, {pipeline_mode = #tpu.pipeline_mode<synchronous>, transform_indices = @transform_13, window_bounds = array<i64: 2, 2, 32>}]} {
    %c0_i32 = arith.constant 0 : i32
    %0 = arith.cmpi eq, %arg0, %c0_i32 : i32
    %1 = arith.extui %0 : i1 to i32
    %c0_i32_0 = arith.constant 0 : i32
    %2 = arith.cmpi ne, %1, %c0_i32_0 : i32
    scf.if %2 {
      %c0_60 = arith.constant 0 : index
      %c0_61 = arith.constant 0 : index
      %c0_62 = arith.constant 0 : index
      %93 = vector.load %arg11[%c0_60, %c0_61, %c0_62] : memref<2x2x32xf32, #tpu.memory_space<vmem>>, vector<2x2x32xf32>
      %c0_63 = arith.constant 0 : index
      %c0_64 = arith.constant 0 : index
      %c0_65 = arith.constant 0 : index
      %94 = vector.load %arg17[%c0_63, %c0_64, %c0_65] : memref<2x2x32xf32, #tpu.memory_space<vmem>>, vector<2x2x32xf32>
      tpu.vector_store %arg17[%c0_63, %c0_64, %c0_65], %93 {strides = array<i32>} : memref<2x2x32xf32, #tpu.memory_space<vmem>>, vector<2x2x32xf32>,
      %c0_66 = arith.constant 0 : index
      %c0_67 = arith.constant 0 : index
      %c0_68 = arith.constant 0 : index
      %95 = vector.load %arg12[%c0_66, %c0_67, %c0_68] : memref<2x2x32xf32, #tpu.memory_space<vmem>>, vector<2x2x32xf32>
      %c0_69 = arith.constant 0 : index
      %c0_70 = arith.constant 0 : index
      %c0_71 = arith.constant 0 : index
      %96 = vector.load %arg18[%c0_69, %c0_70, %c0_71] : memref<2x2x32xf32, #tpu.memory_space<vmem>>, vector<2x2x32xf32>
      tpu.vector_store %arg18[%c0_69, %c0_70, %c0_71], %95 {strides = array<i32>} : memref<2x2x32xf32, #tpu.memory_space<vmem>>, vector<2x2x32xf32>,
    } else {
    }
    %3 = arith.index_cast %arg0 : i32 to index
    %c0 = arith.constant 0 : index
    %4 = memref.load %arg1[%3, %c0] : memref<1x2xi32, #tpu.memory_space<smem>>
    %5 = arith.index_cast %4 : i32 to index
    %c0_1 = arith.constant 0 : index
    %6 = vector.load %arg2[%5, %c0_1] : memref<64x32xf32, #tpu.memory_space<vmem>>, vector<1x32xf32>
    %c0_2 = arith.constant 0 : index
    %c0_3 = arith.constant 0 : index
    %7 = vector.load %arg16[%c0_2, %c0_3] : memref<2x32xf32, #tpu.memory_space<vmem>>, vector<1x32xf32>
    tpu.vector_store %arg16[%c0_2, %c0_3], %6 {strides = array<i32>} : memref<2x32xf32, #tpu.memory_space<vmem>>, vector<1x32xf32>,
    %8 = arith.index_cast %arg0 : i32 to index
    %c1 = arith.constant 1 : index
    %9 = memref.load %arg1[%8, %c1] : memref<1x2xi32, #tpu.memory_space<smem>>
    %10 = arith.index_cast %9 : i32 to index
    %c0_4 = arith.constant 0 : index
    %11 = vector.load %arg2[%10, %c0_4] : memref<64x32xf32, #tpu.memory_space<vmem>>, vector<1x32xf32>
    %c1_5 = arith.constant 1 : index
    %c0_6 = arith.constant 0 : index
    %12 = vector.load %arg16[%c1_5, %c0_6] : memref<2x32xf32, #tpu.memory_space<vmem>>, vector<1x32xf32>
    tpu.vector_store %arg16[%c1_5, %c0_6], %11 {strides = array<i32>} : memref<2x32xf32, #tpu.memory_space<vmem>>, vector<1x32xf32>,
    %c0_7 = arith.constant 0 : index
    %c0_8 = arith.constant 0 : index
    %13 = vector.load %arg16[%c0_7, %c0_8] : memref<2x32xf32, #tpu.memory_space<vmem>>, vector<2x32xf32>
    %c0_9 = arith.constant 0 : index
    %c0_10 = arith.constant 0 : index
    %c0_11 = arith.constant 0 : index
    %14 = vector.load %arg17[%c0_9, %c0_10, %c0_11] : memref<2x2x32xf32, #tpu.memory_space<vmem>>, vector<1x2x32xf32>
    %15 = vector.shape_cast %14 : vector<1x2x32xf32> to vector<2x32xf32>
    %c0_12 = arith.constant 0 : index
    %c0_13 = arith.constant 0 : index
    %c0_14 = arith.constant 0 : index
    %16 = vector.load %arg18[%c0_12, %c0_13, %c0_14] : memref<2x2x32xf32, #tpu.memory_space<vmem>>, vector<1x2x32xf32>
    %17 = vector.shape_cast %16 : vector<1x2x32xf32> to vector<2x32xf32>
    %c0_15 = arith.constant 0 : index
    %c0_16 = arith.constant 0 : index
    %18 = vector.load %arg3[%c0_15, %c0_16] : memref<32x128xf32, #tpu.memory_space<vmem>>, vector<32x128xf32>
    %cst = arith.constant dense<0.000000e+00> : vector<2x128xf32>
    %19 = tpu.matmul %13, %18, %cst {dimension_numbers = #tpu.dot_dimension_numbers<[1], [0], [0], [1], [0, 0, 1, 1], [], []>} : vector<2x32xf32>, vector<32x128xf32>, vector<2x128xf32> -> vector<2x128xf32>
    %c0_17 = arith.constant 0 : index
    %c0_18 = arith.constant 0 : index
    %20 = vector.load %arg4[%c0_17, %c0_18] : memref<32x128xf32, #tpu.memory_space<vmem>>, vector<32x128xf32>
    %cst_19 = arith.constant dense<0.000000e+00> : vector<2x128xf32>
    %21 = tpu.matmul %15, %20, %cst_19 {dimension_numbers = #tpu.dot_dimension_numbers<[1], [0], [0], [1], [0, 0, 1, 1], [], []>} : vector<2x32xf32>, vector<32x128xf32>, vector<2x128xf32> -> vector<2x128xf32>
    %22 = arith.addf %19, %21 : vector<2x128xf32>
    %c0_20 = arith.constant 0 : index
    %c0_21 = arith.constant 0 : index
    %23 = vector.load %arg5[%c0_20, %c0_21] : memref<1x128xf32, #tpu.memory_space<vmem>>, vector<1x128xf32>
    %24 = vector.broadcast %23 : vector<1x128xf32> to vector<2x128xf32>
    %25 = arith.addf %22, %24 : vector<2x128xf32>
    %26 = vector.extract_strided_slice %25 {offsets = [0, 0], sizes = [2, 96], strides = [1, 1]} : vector<2x128xf32> to vector<2x96xf32>
    %27 = arith.negf %26 : vector<2x96xf32>
    %28 = math.exp %27 : vector<2x96xf32>
    %cst_22 = arith.constant 1.000000e+00 : f32
    %29 = vector.broadcast %cst_22 : f32 to vector<2x96xf32>
    %30 = arith.addf %29, %28 : vector<2x96xf32>
    %31 = arith.divf %29, %30 : vector<2x96xf32>
    %32 = vector.extract_strided_slice %25 {offsets = [0, 96], sizes = [2, 32], strides = [1, 1]} : vector<2x128xf32> to vector<2x32xf32>
    %33 = math.tanh %32 : vector<2x32xf32>
    %34 = vector.extract_strided_slice %31 {offsets = [0, 0], sizes = [2, 32], strides = [1, 1]} : vector<2x96xf32> to vector<2x32xf32>
    %35 = vector.extract_strided_slice %31 {offsets = [0, 32], sizes = [2, 32], strides = [1, 1]} : vector<2x96xf32> to vector<2x32xf32>
    %36 = vector.extract_strided_slice %31 {offsets = [0, 64], sizes = [2, 32], strides = [1, 1]} : vector<2x96xf32> to vector<2x32xf32>
    %37 = arith.mulf %35, %17 : vector<2x32xf32>
    %38 = arith.mulf %34, %33 : vector<2x32xf32>
    %39 = arith.addf %37, %38 : vector<2x32xf32>
    %40 = math.tanh %39 : vector<2x32xf32>
    %41 = arith.mulf %36, %40 : vector<2x32xf32>
    %c0_23 = arith.constant 0 : index
    %c0_24 = arith.constant 0 : index
    %c0_25 = arith.constant 0 : index
    %42 = vector.load %arg17[%c0_23, %c0_24, %c0_25] : memref<2x2x32xf32, #tpu.memory_space<vmem>>, vector<1x2x32xf32>
    %43 = vector.shape_cast %42 : vector<1x2x32xf32> to vector<2x32xf32>
    %44 = vector.shape_cast %41 : vector<2x32xf32> to vector<1x2x32xf32>
    tpu.vector_store %arg17[%c0_23, %c0_24, %c0_25], %44 {strides = array<i32>} : memref<2x2x32xf32, #tpu.memory_space<vmem>>, vector<1x2x32xf32>,
    %c0_26 = arith.constant 0 : index
    %c0_27 = arith.constant 0 : index
    %c0_28 = arith.constant 0 : index
    %45 = vector.load %arg18[%c0_26, %c0_27, %c0_28] : memref<2x2x32xf32, #tpu.memory_space<vmem>>, vector<1x2x32xf32>
    %46 = vector.shape_cast %45 : vector<1x2x32xf32> to vector<2x32xf32>
    %47 = vector.shape_cast %39 : vector<2x32xf32> to vector<1x2x32xf32>
    tpu.vector_store %arg18[%c0_26, %c0_27, %c0_28], %47 {strides = array<i32>} : memref<2x2x32xf32, #tpu.memory_space<vmem>>, vector<1x2x32xf32>,
    %c1_29 = arith.constant 1 : index
    %c0_30 = arith.constant 0 : index
    %c0_31 = arith.constant 0 : index
    %48 = vector.load %arg17[%c1_29, %c0_30, %c0_31] : memref<2x2x32xf32, #tpu.memory_space<vmem>>, vector<1x2x32xf32>
    %49 = vector.shape_cast %48 : vector<1x2x32xf32> to vector<2x32xf32>
    %c1_32 = arith.constant 1 : index
    %c0_33 = arith.constant 0 : index
    %c0_34 = arith.constant 0 : index
    %50 = vector.load %arg18[%c1_32, %c0_33, %c0_34] : memref<2x2x32xf32, #tpu.memory_space<vmem>>, vector<1x2x32xf32>
    %51 = vector.shape_cast %50 : vector<1x2x32xf32> to vector<2x32xf32>
    %c0_35 = arith.constant 0 : index
    %c0_36 = arith.constant 0 : index
    %52 = vector.load %arg6[%c0_35, %c0_36] : memref<32x128xf32, #tpu.memory_space<vmem>>, vector<32x128xf32>
    %cst_37 = arith.constant dense<0.000000e+00> : vector<2x128xf32>
    %53 = tpu.matmul %41, %52, %cst_37 {dimension_numbers = #tpu.dot_dimension_numbers<[1], [0], [0], [1], [0, 0, 1, 1], [], []>} : vector<2x32xf32>, vector<32x128xf32>, vector<2x128xf32> -> vector<2x128xf32>
    %c0_38 = arith.constant 0 : index
    %c0_39 = arith.constant 0 : index
    %54 = vector.load %arg7[%c0_38, %c0_39] : memref<32x128xf32, #tpu.memory_space<vmem>>, vector<32x128xf32>
    %cst_40 = arith.constant dense<0.000000e+00> : vector<2x128xf32>
    %55 = tpu.matmul %49, %54, %cst_40 {dimension_numbers = #tpu.dot_dimension_numbers<[1], [0], [0], [1], [0, 0, 1, 1], [], []>} : vector<2x32xf32>, vector<32x128xf32>, vector<2x128xf32> -> vector<2x128xf32>
    %56 = arith.addf %53, %55 : vector<2x128xf32>
    %c0_41 = arith.constant 0 : index
    %c0_42 = arith.constant 0 : index
    %57 = vector.load %arg8[%c0_41, %c0_42] : memref<1x128xf32, #tpu.memory_space<vmem>>, vector<1x128xf32>
    %58 = vector.broadcast %57 : vector<1x128xf32> to vector<2x128xf32>
    %59 = arith.addf %56, %58 : vector<2x128xf32>
    %60 = vector.extract_strided_slice %59 {offsets = [0, 0], sizes = [2, 96], strides = [1, 1]} : vector<2x128xf32> to vector<2x96xf32>
    %61 = arith.negf %60 : vector<2x96xf32>
    %62 = math.exp %61 : vector<2x96xf32>
    %cst_43 = arith.constant 1.000000e+00 : f32
    %63 = vector.broadcast %cst_43 : f32 to vector<2x96xf32>
    %64 = arith.addf %63, %62 : vector<2x96xf32>
    %65 = arith.divf %63, %64 : vector<2x96xf32>
    %66 = vector.extract_strided_slice %59 {offsets = [0, 96], sizes = [2, 32], strides = [1, 1]} : vector<2x128xf32> to vector<2x32xf32>
    %67 = math.tanh %66 : vector<2x32xf32>
    %68 = vector.extract_strided_slice %65 {offsets = [0, 0], sizes = [2, 32], strides = [1, 1]} : vector<2x96xf32> to vector<2x32xf32>
    %69 = vector.extract_strided_slice %65 {offsets = [0, 32], sizes = [2, 32], strides = [1, 1]} : vector<2x96xf32> to vector<2x32xf32>
    %70 = vector.extract_strided_slice %65 {offsets = [0, 64], sizes = [2, 32], strides = [1, 1]} : vector<2x96xf32> to vector<2x32xf32>
    %71 = arith.mulf %69, %51 : vector<2x32xf32>
    %72 = arith.mulf %68, %67 : vector<2x32xf32>
    %73 = arith.addf %71, %72 : vector<2x32xf32>
    %74 = math.tanh %73 : vector<2x32xf32>
    %75 = arith.mulf %70, %74 : vector<2x32xf32>
    %c1_44 = arith.constant 1 : index
    %c0_45 = arith.constant 0 : index
    %c0_46 = arith.constant 0 : index
    %76 = vector.load %arg17[%c1_44, %c0_45, %c0_46] : memref<2x2x32xf32, #tpu.memory_space<vmem>>, vector<1x2x32xf32>
    %77 = vector.shape_cast %76 : vector<1x2x32xf32> to vector<2x32xf32>
    %78 = vector.shape_cast %75 : vector<2x32xf32> to vector<1x2x32xf32>
    tpu.vector_store %arg17[%c1_44, %c0_45, %c0_46], %78 {strides = array<i32>} : memref<2x2x32xf32, #tpu.memory_space<vmem>>, vector<1x2x32xf32>,
    %c1_47 = arith.constant 1 : index
    %c0_48 = arith.constant 0 : index
    %c0_49 = arith.constant 0 : index
    %79 = vector.load %arg18[%c1_47, %c0_48, %c0_49] : memref<2x2x32xf32, #tpu.memory_space<vmem>>, vector<1x2x32xf32>
    %80 = vector.shape_cast %79 : vector<1x2x32xf32> to vector<2x32xf32>
    %81 = vector.shape_cast %73 : vector<2x32xf32> to vector<1x2x32xf32>
    tpu.vector_store %arg18[%c1_47, %c0_48, %c0_49], %81 {strides = array<i32>} : memref<2x2x32xf32, #tpu.memory_space<vmem>>, vector<1x2x32xf32>,
    %c0_50 = arith.constant 0 : index
    %c0_51 = arith.constant 0 : index
    %82 = vector.load %arg9[%c0_50, %c0_51] : memref<32x64xf32, #tpu.memory_space<vmem>>, vector<32x64xf32>
    %cst_52 = arith.constant dense<0.000000e+00> : vector<2x64xf32>
    %83 = tpu.matmul %75, %82, %cst_52 {dimension_numbers = #tpu.dot_dimension_numbers<[1], [0], [0], [1], [0, 0, 1, 1], [], []>} : vector<2x32xf32>, vector<32x64xf32>, vector<2x64xf32> -> vector<2x64xf32>
    %c0_53 = arith.constant 0 : index
    %c0_54 = arith.constant 0 : index
    %84 = vector.load %arg10[%c0_53, %c0_54] : memref<1x64xf32, #tpu.memory_space<vmem>>, vector<1x64xf32>
    %85 = vector.broadcast %84 : vector<1x64xf32> to vector<2x64xf32>
    %86 = arith.addf %83, %85 : vector<2x64xf32>
    %c0_55 = arith.constant 0 : index
    %c0_56 = arith.constant 0 : index
    %c0_57 = arith.constant 0 : index
    %87 = vector.load %arg13[%c0_55, %c0_56, %c0_57] : memref<1x2x64xf32, #tpu.memory_space<vmem>>, vector<1x2x64xf32>
    %88 = vector.shape_cast %87 : vector<1x2x64xf32> to vector<2x64xf32>
    %89 = vector.shape_cast %86 : vector<2x64xf32> to vector<1x2x64xf32>
    tpu.vector_store %arg13[%c0_55, %c0_56, %c0_57], %89 {strides = array<i32>} : memref<1x2x64xf32, #tpu.memory_space<vmem>>, vector<1x2x64xf32>,
    %c0_i32_58 = arith.constant 0 : i32
    %90 = arith.cmpi eq, %arg0, %c0_i32_58 : i32
    %91 = arith.extui %90 : i1 to i32
    %c0_i32_59 = arith.constant 0 : i32
    %92 = arith.cmpi ne, %91, %c0_i32_59 : i32
    scf.if %92 {
      %c0_60 = arith.constant 0 : index
      %c0_61 = arith.constant 0 : index
      %c0_62 = arith.constant 0 : index
      %93 = vector.load %arg17[%c0_60, %c0_61, %c0_62] : memref<2x2x32xf32, #tpu.memory_space<vmem>>, vector<2x2x32xf32>
      %c0_63 = arith.constant 0 : index
      %c0_64 = arith.constant 0 : index
      %c0_65 = arith.constant 0 : index
      %94 = vector.load %arg14[%c0_63, %c0_64, %c0_65] : memref<2x2x32xf32, #tpu.memory_space<vmem>>, vector<2x2x32xf32>
      tpu.vector_store %arg14[%c0_63, %c0_64, %c0_65], %93 {strides = array<i32>} : memref<2x2x32xf32, #tpu.memory_space<vmem>>, vector<2x2x32xf32>,
      %c0_66 = arith.constant 0 : index
      %c0_67 = arith.constant 0 : index
      %c0_68 = arith.constant 0 : index
      %95 = vector.load %arg18[%c0_66, %c0_67, %c0_68] : memref<2x2x32xf32, #tpu.memory_space<vmem>>, vector<2x2x32xf32>
      %c0_69 = arith.constant 0 : index
      %c0_70 = arith.constant 0 : index
      %c0_71 = arith.constant 0 : index
      %96 = vector.load %arg15[%c0_69, %c0_70, %c0_71] : memref<2x2x32xf32, #tpu.memory_space<vmem>>, vector<2x2x32xf32>
      tpu.vector_store %arg15[%c0_69, %c0_70, %c0_71], %95 {strides = array<i32>} : memref<2x2x32xf32, #tpu.memory_space<vmem>>, vector<2x2x32xf32>,
    } else {
    }
    return
  }
  func.func @transform_0(%arg0: i32, %arg1: memref<1x2xi32, #tpu.memory_space<smem>>) -> (i32, i32) {
    %c0_i32 = arith.constant 0 : i32
    %c0_i32_0 = arith.constant 0 : i32
    %c0_i32_1 = arith.constant 0 : i32
    return %c0_i32, %c0_i32_0 : i32, i32
  }
  func.func @transform_1(%arg0: i32, %arg1: memref<1x2xi32, #tpu.memory_space<smem>>) -> (i32, i32) {
    %c0_i32 = arith.constant 0 : i32
    %c0_i32_0 = arith.constant 0 : i32
    %c0_i32_1 = arith.constant 0 : i32
    return %c0_i32, %c0_i32_0 : i32, i32
  }
  func.func @transform_2(%arg0: i32, %arg1: memref<1x2xi32, #tpu.memory_space<smem>>) -> (i32, i32) {
    %c0_i32 = arith.constant 0 : i32
    %c0_i32_0 = arith.constant 0 : i32
    %c0_i32_1 = arith.constant 0 : i32
    return %c0_i32, %c0_i32_0 : i32, i32
  }
  func.func @transform_3(%arg0: i32, %arg1: memref<1x2xi32, #tpu.memory_space<smem>>) -> (i32, i32) {
    %c0_i32 = arith.constant 0 : i32
    %c0_i32_0 = arith.constant 0 : i32
    %c0_i32_1 = arith.constant 0 : i32
    return %c0_i32, %c0_i32_0 : i32, i32
  }
  func.func @transform_4(%arg0: i32, %arg1: memref<1x2xi32, #tpu.memory_space<smem>>) -> (i32, i32) {
    %c0_i32 = arith.constant 0 : i32
    %c0_i32_0 = arith.constant 0 : i32
    %c0_i32_1 = arith.constant 0 : i32
    return %c0_i32, %c0_i32_0 : i32, i32
  }
  func.func @transform_5(%arg0: i32, %arg1: memref<1x2xi32, #tpu.memory_space<smem>>) -> (i32, i32) {
    %c0_i32 = arith.constant 0 : i32
    %c0_i32_0 = arith.constant 0 : i32
    %c0_i32_1 = arith.constant 0 : i32
    return %c0_i32, %c0_i32_0 : i32, i32
  }
  func.func @transform_6(%arg0: i32, %arg1: memref<1x2xi32, #tpu.memory_space<smem>>) -> (i32, i32) {
    %c0_i32 = arith.constant 0 : i32
    %c0_i32_0 = arith.constant 0 : i32
    %c0_i32_1 = arith.constant 0 : i32
    return %c0_i32, %c0_i32_0 : i32, i32
  }
  func.func @transform_7(%arg0: i32, %arg1: memref<1x2xi32, #tpu.memory_space<smem>>) -> (i32, i32) {
    %c0_i32 = arith.constant 0 : i32
    %c0_i32_0 = arith.constant 0 : i32
    %c0_i32_1 = arith.constant 0 : i32
    return %c0_i32, %c0_i32_0 : i32, i32
  }
  func.func @transform_8(%arg0: i32, %arg1: memref<1x2xi32, #tpu.memory_space<smem>>) -> (i32, i32) {
    %c0_i32 = arith.constant 0 : i32
    %c0_i32_0 = arith.constant 0 : i32
    %c0_i32_1 = arith.constant 0 : i32
    return %c0_i32, %c0_i32_0 : i32, i32
  }
  func.func @transform_9(%arg0: i32, %arg1: memref<1x2xi32, #tpu.memory_space<smem>>) -> (i32, i32, i32) {
    %c0_i32 = arith.constant 0 : i32
    %c0_i32_0 = arith.constant 0 : i32
    %c0_i32_1 = arith.constant 0 : i32
    %c0_i32_2 = arith.constant 0 : i32
    return %c0_i32, %c0_i32_0, %c0_i32_1 : i32, i32, i32
  }
  func.func @transform_10(%arg0: i32, %arg1: memref<1x2xi32, #tpu.memory_space<smem>>) -> (i32, i32, i32) {
    %c0_i32 = arith.constant 0 : i32
    %c0_i32_0 = arith.constant 0 : i32
    %c0_i32_1 = arith.constant 0 : i32
    %c0_i32_2 = arith.constant 0 : i32
    return %c0_i32, %c0_i32_0, %c0_i32_1 : i32, i32, i32
  }
  func.func @transform_11(%arg0: i32, %arg1: memref<1x2xi32, #tpu.memory_space<smem>>) -> (i32, i32, i32) {
    %c0_i32 = arith.constant 0 : i32
    %c0_i32_0 = arith.constant 0 : i32
    %c0_i32_1 = arith.constant 0 : i32
    return %arg0, %c0_i32, %c0_i32_0 : i32, i32, i32
  }
  func.func @transform_12(%arg0: i32, %arg1: memref<1x2xi32, #tpu.memory_space<smem>>) -> (i32, i32, i32) {
    %c0_i32 = arith.constant 0 : i32
    %c0_i32_0 = arith.constant 0 : i32
    %c0_i32_1 = arith.constant 0 : i32
    %c0_i32_2 = arith.constant 0 : i32
    return %c0_i32, %c0_i32_0, %c0_i32_1 : i32, i32, i32
  }
  func.func @transform_13(%arg0: i32, %arg1: memref<1x2xi32, #tpu.memory_space<smem>>) -> (i32, i32, i32) {
    %c0_i32 = arith.constant 0 : i32
    %c0_i32_0 = arith.constant 0 : i32
    %c0_i32_1 = arith.constant 0 : i32
    %c0_i32_2 = arith.constant 0 : i32
    return %c0_i32, %c0_i32_0, %c0_i32_1 : i32, i32, i32
  }
}

</mosaic_0001>

<bundles_post_ra>
// kernel: decoder_step.1
= control target key start
LH: loop header
LB: loop body
LE: loop exit
PB: predicated region body
PF: predicated region fallthrough
CT: control target
= control target key end

     0   :  { %s1261_s0 = inlined_call_operand.vmem [shape: s32[1,2], index: 0, kind: input, shape index: {}]   ;;  %s1262_s1 = inlined_call_operand.vmem [shape: f32[64,32], index: 1, kind: input, shape index: {}]   ;;  %s1263_s2 = inlined_call_operand.vmem [shape: f32[32,128], index: 2, kind: input, shape index: {}]   ;;  %s1264_s3 = inlined_call_operand.vmem [shape: f32[32,128], index: 3, kind: input, shape index: {}]   ;;  %s1265_s4 = inlined_call_operand.vmem [shape: f32[1,128], index: 4, kind: input, shape index: {}]   ;;  %s1266_s5 = inlined_call_operand.vmem [shape: f32[32,128], index: 5, kind: input, shape index: {}]   ;;  %s1267_s6 = inlined_call_operand.hbm [shape: f32[32,128], index: 6, kind: input, shape index: {}]   ;;  %s1268_s7 = inlined_call_operand.vmem [shape: f32[1,128], index: 7, kind: input, shape index: {}]   ;;  %s1269_s8 = inlined_call_operand.hbm [shape: f32[32,64], index: 8, kind: input, shape index: {}]   ;;  %s1270_s9 = inlined_call_operand.hbm [shape: f32[1,64], index: 9, kind: input, shape index: {}]   ;;  %s1271_s10 = inlined_call_operand.vmem [shape: f32[2,2,32], index: 10, kind: input, shape index: {}]   ;;  %s1272_s11 = inlined_call_operand.vmem [shape: f32[2,2,32], index: 11, kind: input, shape index: {}]   ;;  %s1273_s12 = inlined_call_operand.hbm [shape: f32[1,2,64], index: 12, kind: output, shape index: {0}]   ;;  %s1274_s13 = inlined_call_operand.hbm [shape: f32[2,2,32], index: 13, kind: output, shape index: {1}]   ;;  %s1275_s14 = inlined_call_operand.hbm [shape: f32[2,2,32], index: 14, kind: output, shape index: {2}]  }
   0x1   :  { %s20_s15 = sshll.u32 %s1261_s0, 4  ;;  %s21_s15 = int_to_ptr.vmem [resolvable:$true] %s20_s15 }
   0x2   :  { %s819_s16 = scalar_lea.vmem %s21_s15, 16  ;;  %p824_p1 = scmp.lt.s32.totalorder %s21_s15, %s21_s15 }
   0x3   :  { %p820_p0 = scmp.ne.s32.totalorder %s21_s15, %s819_s16  ;;  %p825_p2 = scmp.lt.s32.totalorder %s819_s16, %s819_s16 }
   0x5   :  { %p826_p3 = por %p825_p2, %p824_p1 }
   0x7   :  { %p827_p4 = pnand %p826_p3, %p820_p0 }
   0x9   :  { %830 = shalt.err (!%p827_p4)  }
   0xa   :  { %s973_s17 = smov [#allocation6]  }
   0xb   :  { %23 = dma.vmem_to_smem %s21_s15, 16, %s973_s17, [#allocation5] }
   0xc   :  { %963 = dma.done.wait [#allocation5], 16 }
   0xd   :  { %964 = vsyncadd [#allocation5], 4294967280 }
   0xe   :  { %25 = sfence }
   0xf   :  { %26 = vsyncpa [#allocation8], 0 }
  0x10   :  { %27 = vsyncpa [#allocation11], 0 }
  0x11   :  { %28 = vsyncpa [#allocation9], 0 }
  0x12   :  { %29 = vsyncpa [#allocation15], 0  ;;  %s974_s18 = smov [#allocation10]   ;;  %s975_s0 = smov [#allocation7]  }
  0x13   :  { %s59_s19 = sshll.u32 %s974_s18, 4  ;;  %s45_s20 = sshll.u32 %s975_s0, 4  ;;  %s60_s19 = int_to_ptr.vmem [resolvable:$true] %s59_s19  ;;  %s1067_s20 = int_to_ptr.vmem [resolvable:$true] %s45_s20 }
  0x14   :  { %s831_s23 = scalar_lea.hbm %s1269_s8, 512 }
  0x15   :  { %p832_p5 = scmp.ne.s32.totalorder %s1269_s8, %s831_s23  ;;  %p835_p6 = scmp.lt.u32.totalorder %s831_s23, %s1269_s8 }
  0x17   :  { %p837_p7 = pnand %p835_p6, %p832_p5 }
  0x19   :  { %840 = shalt.err (!%p837_p7)
}
  0x1a   :  { %s841_s28 = scalar_lea.vmem %s60_s19, 512  ;;  %p846_p9 = scmp.lt.s32.totalorder %s60_s19, %s60_s19 }
  0x1b   :  { %p842_p8 = scmp.ne.s32.totalorder %s60_s19, %s841_s28  ;;  %p847_p10 = scmp.lt.s32.totalorder %s841_s28, %s841_s28 }
  0x1d   :  { %p848_p11 = por %p847_p10, %p846_p9 }
  0x1f   :  { %p849_p12 = pnand %p848_p11, %p842_p8 }
  0x21   :  { %852 = shalt.err (!%p849_p12)
}
  0x22   :  { %s976_s29 = smov 128   ;;  %s977_s30 = smov 8  }
  0x23   :  { %65 = dma.hbm_to_vmem [thread:$0]  %s1269_s8, 512, %s60_s19, [#allocation11], %s976_s29, %s976_s29, %s977_s30  }
  0x24   :  { %s853_s0 = scalar_lea.hbm %s1267_s6, 512 }
  0x25   :  { %p854_p13 = scmp.ne.s32.totalorder %s1267_s6, %s853_s0  ;;  %p857_p0 = scmp.lt.u32.totalorder %s853_s0, %s1267_s6 }
  0x27   :  { %p859_p1 = pnand %p857_p0, %p854_p13 }
  0x29   :  { %862 = shalt.err (!%p859_p1)
}
  0x2a   :  { %s863_s25 = scalar_lea.vmem %s1067_s20, 512  ;;  %p868_p3 = scmp.lt.s32.totalorder %s1067_s20, %s1067_s20 }
  0x2b   :  { %p864_p2 = scmp.ne.s32.totalorder %s1067_s20, %s863_s25  ;;  %p869_p4 = scmp.lt.s32.totalorder %s863_s25, %s863_s25 }
  0x2d   :  { %p870_p5 = por %p869_p4, %p868_p3 }
  0x2f   :  { %p871_p6 = pnand %p870_p5, %p864_p2 }
  0x31   :  { %874 = shalt.err (!%p871_p6)
}
  0x32   :  { %51 = dma.hbm_to_vmem [thread:$0]  %s1267_s6, 512, %s1067_s20, [#allocation8], %s976_s29, %s976_s29, %s977_s30  }
  0x33   :  { %s978_s26 = smov [#allocation12]   ;;  %s875_s16 = scalar_lea.hbm %s1270_s9, 16 }
  0x34   :  { %s72_s27 = sshll.u32 %s978_s26, 4  ;;  %p876_p7 = scmp.ne.s32.totalorder %s1270_s9, %s875_s16  ;;  %s73_s27 = int_to_ptr.vmem [resolvable:$true] %s72_s27 }
  0x35   :  { %p879_p8 = scmp.lt.u32.totalorder %s875_s16, %s1270_s9 }
  0x37   :  { %p881_p9 = pnand %p879_p8, %p876_p7 }
  0x39   :  { %884 = shalt.err (!%p881_p9)
}
  0x3a   :  { %s885_s22 = scalar_lea.vmem %s73_s27, 16  ;;  %s889_s6 = scalar_lea.vmem %s73_s27, 32 }
  0x3b   :  { %p886_p10 = scmp.ne.s32.totalorder %s73_s27, %s885_s22  ;;  %p890_p11 = scmp.lt.s32.totalorder %s73_s27, %s73_s27 }
  0x3c   :  { %p891_p12 = scmp.lt.s32.totalorder %s889_s6, %s885_s22 }
  0x3e   :  { %p892_p13 = por %p891_p12, %p890_p11 }
  0x40   :  { %p893_p0 = pnand %p892_p13, %p886_p10 }
  0x42   :  { %896 = shalt.err (!%p893_p0)
}
  0x43   :  { %75 = dma.hbm_to_vmem [thread:$0]  %s1270_s9, 16, %s73_s27, [#allocation11]  }
  0x44   :  { %965 = dma.done.wait [#allocation8], 512  }
  0x45   :  { %966 = vsyncadd [#allocation8], 4294966784 }
  0x46   :  { %967 = dma.done.wait [#allocation11], 528  }
  0x47   :  { %968 = vsyncadd [#allocation11], 4294966768  ;;  %v979_v0 = vmov 0.0|0.0   ;;  %s103_s30 = sld [smem:[#allocation6]]  ;;  %s666_s23 = sld [smem:[#allocation6 + $0x1]]  ;;  %vm980_vm0 = vmmov 0  }
  0x48   :  { %757 = vmatprep.subr.bf16.mxu0 %v979_v0  ;;  %763 = vmatprep.subr.bf16.mxu1 %v979_v0  ;;  %v981_v1 = vmov 0.0   ;;  %v120_v2 = vld [vmem:[%s1264_s3] sm:$0xff]  ;;  %v121_v3 = vld [vmem:[%s1264_s3 + $0x8] sm:$0xff]  ;;  %vm95_vm1 = vcmask 254976   ;;  %v122_v7 = vld [vmem:[%s1264_s3 + $0x10] sm:$0xff]  ;;  %vm106_vm2 = vcmask 253952  }
  0x49   :  { %710 = vmatprep.mubr.msk.f32.mxu0 %vm980_vm0, %v981_v1  ;;  %721 = vmatprep.mubr.msk.f32.mxu1 %vm980_vm0, %v981_v1  ;;  %v116_v4 = vld [vmem:[%s1263_s2] sm:$0xff]  ;;  %v758_v5 = vpack.c.bf16 %v121_v3, %v120_v2  ;;  %v117_v6 = vld [vmem:[%s1263_s2 + $0x8] sm:$0xff]  ;;  %v123_v8 = vld [vmem:[%s1264_s3 + $0x18] sm:$0xff]  ;;  %vm124_vm3 = vcmask 261120   ;;  %s982_s26 = smov 32   ;;  %s983_s6 = smov 64  }
  0x4a   :  { %v764_v9 = vpack.c.bf16 %v117_v6, %v116_v4  ;;  %v118_v10 = vld [vmem:[%s1263_s2 + $0x10] sm:$0xff]  ;;  %v119_v11 = vld [vmem:[%s1263_s2 + $0x18] sm:$0xff]  ;;  %v93_v12 = vld [vmem:[%s1271_s10] sm:$0x3]  ;;  %v761_v13 = vpack.c.bf16 %v123_v8, %v122_v7  ;;  %s985_s29 = smov [#allocation14]  }
  0x4b   :  { %759 = vmatpush3.bf16.msra.mxu0 %v758_v5  ;;  %96 = vst.msk [vmem:[#allocation3] sm:$0x3] %vm95_vm1, %v93_v12  ;;  %v767_v16 = vpack.c.bf16 %v119_v11, %v118_v10  ;;  %v98_v19 = vld [vmem:[%s1272_s11] sm:$0x3]  ;;  %v326_v39 = vld [vmem:[#allocation7] sm:$0xff]  ;;  %v327_v40 = vld [vmem:[#allocation7 + $0x8] sm:$0xff] }
  0x4c   :  { %765 = vmatpush3.bf16.msra.mxu1 %v764_v9  ;;  %760 = vmatprep.subr.bf16.mxu0 %v979_v0  ;;  %100 = vst.msk [vmem:[#allocation4] sm:$0x3] %vm95_vm1, %v98_v19  ;;  %v669_v22 = vld [vmem:[%s1265_s4] ss:$0 sm:$0xff]  ;;  %v770_v42 = vpack.c.bf16 %v327_v40, %v326_v39  ;;  %v323_v43 = vld [vmem:[%s1266_s5 + $0x8] sm:$0xff]  ;;  %v324_v47 = vld [vmem:[%s1266_s5 + $0x10] sm:$0xff] }
  0x4d   :  { %s104_s15 = scalar_lea.vmem %s1262_s1, %s103_s30  ;;  %s110_s18 = scalar_lea.vmem %s1262_s1, %s666_s23  ;;  %766 = vmatprep.subr.bf16.mxu1 %v979_v0  ;;  %v322_v41 = vld [vmem:[%s1266_s5] sm:$0xff]  ;;  %v325_v48 = vld [vmem:[%s1266_s5 + $0x18] sm:$0xff] }
  0x4e   :  { %v105_v14 = vld [vmem:[%s104_s15] sm:$0x1]  ;;  %v329_v45 = vld [vmem:[#allocation7 + $0x18] sm:$0xff]  ;;  %v776_v46 = vpack.c.bf16 %v323_v43, %v322_v41  ;;  %v779_v51 = vpack.c.bf16 %v325_v48, %v324_v47  ;;  %s632_s30 = sshll.u32 %s985_s29, 4  ;;  %s633_s30 = int_to_ptr.vmem [resolvable:$true] %s632_s30 }
  0x4f   :  { %v111_v15 = vld [vmem:[%s110_s18] sm:$0x1]  ;;  %107 = vst.msk [vmem:[#allocation2] sm:$0x1] %vm106_vm2, %v105_v14  ;;  %762 = vmatpush3.bf16.msra.mxu0 %v761_v13  ;;  %v94_v49 = vld [vmem:[%s1271_s10 + $0x2] sm:$0x3]  ;;  %p902_p2 = scmp.lt.s32.totalorder %s633_s30, %s633_s30 }
  0x50   :  { %112 = vst.msk [vmem:[#allocation2 + $0x1] sm:$0x1] %vm106_vm2, %v111_v15  ;;  %768 = vmatpush3.bf16.msra.mxu1 %v767_v16  ;;  %769 = vmatprep.subr.bf16.mxu0 %v979_v0  ;;  %v328_v44 = vld [vmem:[#allocation7 + $0x10] sm:$0xff]  ;;  %v99_v54 = vld [vmem:[%s1272_s11 + $0x2] sm:$0x3]  ;;  %v521_v15 = vld [vmem:[#allocation10] sm:$0xff] }
  0x51   :  { %775 = vmatprep.subr.bf16.mxu1 %v979_v0  ;;  %v773_v50 = vpack.c.bf16 %v329_v45, %v328_v44  ;;  %97 = vst.msk [vmem:[#allocation3 + $0x2] sm:$0x3] %vm95_vm1, %v94_v49  ;;  %101 = vst.msk [vmem:[#allocation4 + $0x2] sm:$0x3] %vm95_vm1, %v99_v54  ;;  %v673_v63 = vld [vmem:[%s1268_s7] ss:$0 sm:$0xff] }
  0x52   :  { %v114_v17 = vld [vmem:[#allocation3] sm:$0x3]  ;;  %v522_v16 = vld [vmem:[#allocation10 + $0x8] sm:$0xff]  ;;  %s984_s7 = smov 96   ;;  %s897_s9 = scalar_lea.vmem %s633_s30, 64 }
  0x53   :  { %711 = vmatmul.mubr.msk.f32.vlgmr.msra.gmra.mrb[0].mxu0 %vm124_vm3, %v114_v17  ;;  %v115_v28 = vld [vmem:[#allocation4] sm:$0x3]  ;;  %v523_v17 = vld [vmem:[#allocation10 + $0x10] sm:$0xff]  ;;  %p898_p1 = scmp.ne.s32.totalorder %s633_s30, %s897_s9  ;;  %p903_p3 = scmp.lt.s32.totalorder %s897_s9, %s897_s9 }
  0x54   :  { %732 = vmatprep.mubr.msk.f32.mxu0 %vm980_vm0, %v981_v1  ;;  %771 = vmatpush3.bf16.msra.mxu0 %v770_v42  ;;  %v524_v19 = vld [vmem:[#allocation10 + $0x18] sm:$0xff] }
  0x55   :  { %772 = vmatprep.subr.bf16.mxu0 %v979_v0  ;;  %p904_p4 = por %p903_p3, %p902_p2 }
  0x57   :  { %v113_v18 = vld [vmem:[#allocation2] sm:$0x3]  ;;  %p905_p5 = pnand %p904_p4, %p898_p1 }
  0x58   :  { %722 = vmatmul.mubr.msk.f32.vlgmr.msra.gmra.mrb[0].mxu1 %vm124_vm3, %v113_v18  ;;  %774 = vmatpush3.bf16.msra.mxu0 %v773_v50  ;;  %v319_v53 = vld [vmem:[#allocation3 + $0x2] sm:$0x3]  ;;  %v321_v57 = vld [vmem:[#allocation4 + $0x2] sm:$0x3]  ;;  %v782_v18 = vpack.c.bf16 %v522_v16, %v521_v15 }
  0x59   :  { %743 = vmatprep.mubr.msk.f32.mxu1 %vm980_vm0, %v981_v1  ;;  %777 = vmatpush3.bf16.msra.mxu1 %v776_v46 }
  0x5a   :  { %778 = vmatprep.subr.bf16.mxu1 %v979_v0  ;;  %781 = vmatprep.subr.bf16.mxu0 %v979_v0 }
  0x5b   :  { %733 = vmatmul.mubr.msk.f32.vlgmr.msra.gmra.mrb[2].mxu0 %vm124_vm3, %v319_v53 }
  0x5c   :  { %754 = vmatprep.mubr.msk.f32.mxu0 %vm980_vm0, %v981_v1  ;;  %783 = vmatpush3.bf16.msra.mxu0 %v782_v18 }
  0x5d   :  { %780 = vmatpush3.bf16.msra.mxu1 %v779_v51  ;;  %784 = vmatprep.subr.bf16.mxu0 %v979_v0 }
 0x126   :  { %v194_v20 = vpop.f32.mrb[0].mxu0 }
 0x127   :  { %v712_v23 = vpop.f32.mrb[1].mxu0 }
 0x12b   :  { %v267_v21 = vpop.f32.mrb[0].mxu1 }
 0x12c   :  { %v268_v24 = vadd.f32 %v267_v21, %v194_v20  ;;  %v723_v25 = vpop.f32.mrb[1].mxu1  ;;  %v785_v20 = vpack.c.bf16 %v524_v19, %v523_v17 }
 0x12e   :  { %v278_v26 = vadd.f32 %v669_v22, %v268_v24  ;;  %v399_v58 = vpop.f32.mrb[2].mxu0  ;;  %786 = vmatpush3.bf16.msra.mxu0 %v785_v20 }
 0x12f   :  { %v734_v59 = vpop.f32.mrb[3].mxu0 }
 0x130   :  { %803 = vtanh.f32 %v278_v26  ;;  %v670_v29 = vmul.f32 -1.442695, %v278_v26 }
 0x132   :  { %805 = vpow2.f32 %v670_v29 }
 0x13a   :  { %v804_v27 = vpop.eup %803 }
 0x13b   :  { %292 = vrot.lane.b32.xlu0 %v804_v27, %s982_s26 }
 0x13c   :  { %v806_v30 = vpop.eup %805 }
 0x13d   :  { %v282_v31 = vadd.f32 1.0, %v806_v30 }
 0x13f   :  { %287 = vrot.lane.b32.xlu0 %v115_v28, %s982_s26  ;;  %807 = vrcp.f32 %v282_v31 }
 0x149   :  { %v808_v32 = vpop.eup %807 }
 0x1ad   :  { %v293_v33 = vpop.permute.xlu0 %292 }
 0x1ae   :  { %v295_v34 = vmul.f32 %v808_v32, %v293_v33 }
 0x1b0   :  { %297 = vrot.lane.b32.xlu1 %v295_v34, %s982_s26 }
 0x1b1   :  { %v288_v35 = vpop.permute.xlu0 %287 }
 0x1b2   :  { %v290_v36 = vmul.f32 %v808_v32, %v288_v35 }
 0x222   :  { %v298_v37 = vpop.permute.xlu1 %297 }
 0x223   :  { %v1170_v38 = vadd.f32 %v298_v37, %v290_v36 }
 0x225   :  { %809 = vtanh.f32 %v1170_v38 }
 0x22f   :  { %v810_v52 = vpop.eup %809 }
 0x230   :  { %303 = vrot.lane.b32.xlu1 %v810_v52, %s982_s26 }
 0x2a2   :  { %v304_v55 = vpop.permute.xlu1 %303 }
 0x2a3   :  { %v306_v56 = vmul.f32 %v808_v32, %v304_v55 }
 0x2a5   :  { %308 = vrot.lane.b32.xlu0 %v306_v56, %s983_s6 }
 0x2a9   :  { %491 = vrot.lane.b32.xlu0 %v321_v57, %s982_s26 }
 0x317   :  { %v309_v60 = vpop.permute.xlu0 %308 }
 0x318   :  { %312 = vst.msk [vmem:[#allocation3] sm:$0x3] %vm95_vm1, %v309_v60  ;;  %744 = vmatmul.mubr.msk.f32.vlgmr.msra.gmra.mrb[2].mxu1 %vm124_vm3, %v309_v60 }
 0x31b   :  { %v492_v11 = vpop.permute.xlu0 %491 }
 0x31f   :  { %v609_v61 = vld [vmem:[#allocation3] sm:$0x3] }
 0x320   :  { %611 = vst.msk [vmem:[#allocation14] sm:$0x3] %vm95_vm1, %v609_v61 }
 0x3eb   :  { %v471_v62 = vpop.f32.mrb[2].mxu1 }
 0x3ec   :  { %v472_v1 = vadd.f32 %v471_v62, %v399_v58  ;;  %v745_v2 = vpop.f32.mrb[3].mxu1 }
 0x3ee   :  { %v482_v3 = vadd.f32 %v673_v63, %v472_v1 }
 0x3f0   :  { %811 = vtanh.f32 %v482_v3  ;;  %v674_v5 = vmul.f32 -1.442695, %v482_v3 }
 0x3f2   :  { %813 = vpow2.f32 %v674_v5 }
 0x3fa   :  { %v812_v4 = vpop.eup %811 }
 0x3fb   :  { %496 = vrot.lane.b32.xlu1 %v812_v4, %s982_s26 }
 0x3fc   :  { %v814_v6 = vpop.eup %813 }
 0x3fd   :  { %v486_v7 = vadd.f32 1.0, %v814_v6 }
 0x3ff   :  { %815 = vrcp.f32 %v486_v7 }
 0x409   :  { %v816_v8 = vpop.eup %815 }
 0x40a   :  { %v494_v12 = vmul.f32 %v816_v8, %v492_v11 }
 0x46d   :  { %v497_v9 = vpop.permute.xlu1 %496 }
 0x46e   :  { %v499_v10 = vmul.f32 %v816_v8, %v497_v9 }
 0x470   :  { %501 = vrot.lane.b32.xlu1 %v499_v10, %s982_s26 }
 0x4e2   :  { %v502_v13 = vpop.permute.xlu1 %501 }
 0x4e3   :  { %v504_v14 = vadd.f32 %v502_v13, %v494_v12 }
 0x4e5   :  { %817 = vtanh.f32 %v504_v14 }
 0x4ef   :  { %v818_v21 = vpop.eup %817 }
 0x4f0   :  { %507 = vrot.lane.b32.xlu0 %v818_v21, %s982_s26 }
 0x4f4   :  { %314 = vrot.lane.b32.xlu0 %v1170_v38, %s984_s7 }
 0x562   :  { %v508_v22 = vpop.permute.xlu0 %507 }
 0x563   :  { %v510_v23 = vmul.f32 %v816_v8, %v508_v22 }
 0x565   :  { %512 = vrot.lane.b32.xlu1 %v510_v23, %s983_s6 }
 0x566   :  { %v315_v24 = vpop.permute.xlu0 %314 }
 0x567   :  { %317 = vst.msk [vmem:[#allocation4] sm:$0x3] %vm95_vm1, %v315_v24 }
 0x569   :  { %517 = vrot.lane.b32.xlu1 %v504_v14, %s984_s7 }
 0x56e   :  { %v613_v25 = vld [vmem:[#allocation4] sm:$0x3] }
 0x56f   :  { %615 = vst.msk [vmem:[#allocation16] sm:$0x3] %vm95_vm1, %v613_v25 }
 0x5d7   :  { %v513_v26 = vpop.permute.xlu1 %512 }
 0x5d8   :  { %515 = vst.msk [vmem:[#allocation3 + $0x2] sm:$0x3] %vm95_vm1, %v513_v26  ;;  %755 = vmatmul.mubr.msk.f32.vlgmr.msra.gmra.mrb[4].mxu0 %vm124_vm3, %v513_v26 }
 0x5db   :  { %v518_v0 = vpop.permute.xlu1 %517 }
 0x5dc   :  { %520 = vst.msk [vmem:[#allocation4 + $0x2] sm:$0x3] %vm95_vm1, %v518_v0 }
 0x5df   :  { %v610_v27 = vld [vmem:[#allocation3 + $0x2] sm:$0x3] }
 0x5e0   :  { %612 = vst.msk [vmem:[#allocation14 + $0x2] sm:$0x3] %vm95_vm1, %v610_v27 }
 0x5e3   :  { %v614_v28 = vld [vmem:[#allocation4 + $0x2] sm:$0x3] }
 0x5e4   :  { %616 = vst.msk [vmem:[#allocation16 + $0x2] sm:$0x3] %vm95_vm1, %v614_v28 }
 0x5e5   :  { %908 = shalt.err (!%p905_p5)
}
 0x5e6   :  { %s909_s24 = scalar_lea.hbm %s1274_s13, 64 }
 0x5e7   :  { %p910_p6 = scmp.ne.s32.totalorder %s1274_s13, %s909_s24  ;;  %p913_p7 = scmp.lt.u32.totalorder %s909_s24, %s1274_s13 }
 0x5e9   :  { %p915_p8 = pnand %p913_p7, %p910_p6 }
 0x5eb   :  { %918 = shalt.err (!%p915_p8)
}
 0x5ec   :  { %s986_s19 = smov 2   ;;  %s987_s28 = smov [#allocation16]  }
 0x5ed   :  { %638 = dma.vmem_to_hbm [thread:$0]  %s633_s30, 64, %s1274_s13, [#allocation15], %s982_s26, %s982_s26, %s986_s19  }
 0x5ee   :  { %s644_s15 = sshll.u32 %s987_s28, 4  ;;  %s645_s15 = int_to_ptr.vmem [resolvable:$true] %s644_s15 }
 0x5ef   :  { %s919_s16 = scalar_lea.vmem %s645_s15, 64  ;;  %p924_p10 = scmp.lt.s32.totalorder %s645_s15, %s645_s15 }
 0x5f0   :  { %p920_p9 = scmp.ne.s32.totalorder %s645_s15, %s919_s16  ;;  %p925_p11 = scmp.lt.s32.totalorder %s919_s16, %s919_s16 }
 0x5f2   :  { %p926_p12 = por %p925_p11, %p924_p10 }
 0x5f4   :  { %p927_p13 = pnand %p926_p12, %p920_p9 }
 0x5f6   :  { %930 = shalt.err (!%p927_p13)
}
 0x5f7   :  { %s931_s0 = scalar_lea.hbm %s1275_s14, 64 }
 0x5f8   :  { %p932_p0 = scmp.ne.s32.totalorder %s1275_s14, %s931_s0  ;;  %p935_p1 = scmp.lt.u32.totalorder %s931_s0, %s1275_s14 }
 0x5fa   :  { %p937_p2 = pnand %p935_p1, %p932_p0 }
 0x5fc   :  { %940 = shalt.err (!%p937_p2)
}
 0x5fd   :  { %650 = dma.vmem_to_hbm [thread:$0]  %s645_s15, 64, %s1275_s14, [#allocation15], %s982_s26, %s982_s26, %s986_s19   ;;  %v675_v29 = vld [vmem:[#allocation12] ss:$0 sm:$0xff]  ;;  %vm604_vm4 = vcmask 517120  }
 0x5fe   :  { %s988_s11 = smov [#allocation13]  }
 0x5ff   :  { %s623_s20 = sshll.u32 %s988_s11, 4  ;;  %s624_s20 = int_to_ptr.vmem [resolvable:$true] %s623_s20 }
 0x600   :  { %s941_s7 = scalar_lea.vmem %s624_s20, 32  ;;  %p946_p4 = scmp.lt.s32.totalorder %s624_s20, %s624_s20 }
 0x601   :  { %p942_p3 = scmp.ne.s32.totalorder %s624_s20, %s941_s7  ;;  %p947_p5 = scmp.lt.s32.totalorder %s941_s7, %s941_s7 }
 0x603   :  { %p948_p6 = por %p947_p5, %p946_p4 }
 0x605   :  { %p949_p7 = pnand %p948_p6, %p942_p3 }
 0x6ab   :  { %v600_v30 = vpop.f32.mrb[4].mxu0 }
 0x6ac   :  { %v601_v31 = vadd.f32 %v675_v29, %v600_v30  ;;  %v756_v32 = vpop.f32.mrb[5].mxu0 }
 0x6ae   :  { %605 = vst.msk [vmem:[#allocation13] sm:$0x3] %vm604_vm4, %v601_v31 }
 0x6af   :  { %952 = shalt.err (!%p949_p7)
}
 0x6b0   :  { %s953_s14 = scalar_lea.hbm %s1273_s12, 32 }
 0x6b1   :  { %p954_p8 = scmp.ne.s32.totalorder %s1273_s12, %s953_s14  ;;  %p957_p9 = scmp.lt.u32.totalorder %s953_s14, %s1273_s12 }
 0x6b3   :  { %p959_p10 = pnand %p957_p9, %p954_p8 }
 0x6b5   :  { %962 = shalt.err (!%p959_p10)
}
 0x6b6   :  { %626 = dma.vmem_to_hbm [thread:$0]  %s624_s20, 32, %s1273_s12, [#allocation9]  }
 0x6b7   :  { %969 = dma.done.wait [#allocation9], 32  }
 0x6b8   :  { %970 = vsyncadd [#allocation9], 4294967264 }
 0x6b9   :  { %971 = dma.done.wait [#allocation15], 128  }
 0x6ba   :  { %972 = vsyncadd [#allocation15], 4294967168 }
 0x6bb   :  { %660 = vsyncpa [#allocation8], 1 }
 0x6bc   :  { %661 = vsyncpa [#allocation11], 1 }
 0x6bd   :  { %662 = vsyncpa [#allocation9], 1 }
 0x6be   :  { %663 = vsyncpa [#allocation15], 1 }

</bundles_post_ra>
